<compile_context>
chip_gen: v7x
topology: tpu7x:2x2x1
jax: 0.10.0
libtpu: 0.0.40
codegen_flags: <defaults>
</compile_context>

<pallas_src>
import functools

import jax
import jax.numpy as jnp
from jax.experimental import pallas as pl
from jax.experimental.pallas import tpu as pltpu

F_IN = 20           # hidden1 in_features
F_HID = 8           # hidden1 out_features
MAX_TILE_ROWS = 8192


def fused_linear_kernel(x_ref, w_ref, c_ref, o_ref):
    """out[i] = sum_k x[i, k] * w[0, k] + c   for one tile of rows.

    x_ref: (TB, 20) VMEM (streamed per grid step, any float dtype)
    w_ref: (1, 20)  VMEM f32 (resident across the grid)
    c_ref: (1, 1)   SMEM f32 scalar bias
    o_ref: (1, TB)  VMEM lane-dense f32 output slab
    """
    x = x_ref[...].astype(jnp.float32)        # upcast in-register (free filler)
    prod = x * w_ref[...]                     # VPU: broadcast (1,20) over (TB,20)
    row = jnp.sum(prod, axis=-1)              # XLU cross-lane reduce -> (TB,)
    o_ref[...] = (row + c_ref[0, 0]).reshape(1, -1)


def fuse_params(w1, b1, w2, b2):
    """Fold the two linears (no activation between them) into one affine map.

    (x @ w1 + b1) @ w2 + b2  ==  x @ (w1 @ w2) + (b1 @ w2 + b2)

    Weight-only computation: call ONCE per weight set, outside the hot path.
    """
    w_row = jnp.dot(w1, w2, preferred_element_type=jnp.float32)
    w_row = w_row.reshape(1, F_IN).astype(jnp.float32)                 # (1, 20)
    c = jnp.dot(b1, w2, preferred_element_type=jnp.float32) + b2
    c = c.reshape(1, 1).astype(jnp.float32)                            # (1, 1)
    return w_row, c


def _round_up(n, m):
    return ((n + m - 1) // m) * m


@functools.partial(jax.jit, static_argnames=("tile_rows",))
def mlp_forward(x, w_row, c_fused, tile_rows=None):
    """Forward pass of the PyTorch module, given pre-fused params.

    x: (B, 20) (f32 or bf16); w_row: (1, 20) f32; c_fused: (1, 1) f32.
    Returns (B, 1) f32.
    """
    B, F = x.shape
    assert F == F_IN

    # Row-tile selection: big lane-aligned tiles for large batches (pipelined,
    # amortizes per-step overhead on every generation), single 8-multiple tile
    # for small batches.
    if tile_rows is None:
        TB = MAX_TILE_ROWS if B >= MAX_TILE_ROWS else _round_up(max(B, 1), 8)
    else:
        TB = tile_rows
    num_tiles = -(-B // TB)
    # (8,128) rule: multi-tile output blocks must be 128-lane multiples;
    # a single tile equals the full output dim so any 8-multiple is fine.
    assert TB % 8 == 0 and (num_tiles == 1 or TB % 128 == 0)

    out = pl.pallas_call(
        fused_linear_kernel,
        out_shape=jax.ShapeDtypeStruct((1, num_tiles * TB), jnp.float32),
        grid_spec=pltpu.PrefetchScalarGridSpec(
            num_scalar_prefetch=0,
            grid=(num_tiles,),
            in_specs=[
                pl.BlockSpec((TB, F_IN), lambda i: (i, 0)),           # x stream
                pl.BlockSpec((1, F_IN), lambda i: (0, 0)),            # fused W (resident)
                pl.BlockSpec(memory_space=pltpu.MemorySpace.SMEM),    # fused bias
            ],
            out_specs=pl.BlockSpec((1, TB), lambda i: (0, i)),        # lane-dense
        ),
        compiler_params=pltpu.CompilerParams(
            # NOTE(v7x): if "parallel" alone does not shard the grid across the
            # two TensorCores, switch to CORE_PARALLEL / core_map.
            dimension_semantics=("parallel",),
            vmem_limit_bytes=32 * 1024 * 1024,
        ),
    )(x, w_row, c_fused)

    return out.reshape(-1, 1)[:B]


def init_params(key):
    """Deterministic init mirroring nn.Linear(20,8) and nn.Linear(8,1).

    PyTorch stores weight as (out, in); we store the transpose (in, out)."""
    k1, k2, k3, k4 = jax.random.split(key, 4)
    bnd1 = 1.0 / jnp.sqrt(20.0)
    bnd2 = 1.0 / jnp.sqrt(8.0)
    w1 = jax.random.uniform(k1, (20, 8), jnp.float32, -bnd1, bnd1)
    b1 = jax.random.uniform(k2, (1, 8), jnp.float32, -bnd1, bnd1)
    w2 = jax.random.uniform(k3, (8, 1), jnp.float32, -bnd2, bnd2)
    b2 = jax.random.uniform(k4, (1, 1), jnp.float32, -bnd2, bnd2)
    return w1, b1, w2, b2


if __name__ == "__main__":
    key = jax.random.PRNGKey(0)
    kx, kx2, kp = jax.random.split(key, 3)
    w1, b1, w2, b2 = init_params(kp)

    # Fuse weights once (hoisted out of the per-call hot path).
    w_row, c_fused = fuse_params(w1, b1, w2, b2)

    # --- small single-tile path (batch=8, features=20) ---
    x = jax.random.normal(kx, (8, 20), jnp.float32)
    out = jax.block_until_ready(mlp_forward(x, w_row, c_fused))
    ref = (x @ w1 + b1) @ w2 + b2
    assert out.shape == (8, 1)
    assert jnp.allclose(out, ref, atol=1e-4, rtol=1e-4)

    # --- multi-tile + partial tail-block path (no jnp.pad; last block reads
    #     past the end of x and the garbage rows are sliced off) ---
    x2 = jax.random.normal(kx2, (130, 20), jnp.float32)
    out2 = jax.block_until_ready(mlp_forward(x2, w_row, c_fused, tile_rows=128))
    ref2 = (x2 @ w1 + b1) @ w2 + b2
    assert out2.shape == (130, 1)
    assert jnp.allclose(out2, ref2, atol=1e-4, rtol=1e-4)

    print("KERNEL_OK")
</pallas_src>

<mosaic_0001>
module attributes {stable_mosaic.version = 11 : i64} {
  func.func @fused_linear_kernel(%arg0: i32, %arg1: memref<8x20xf32, #tpu.memory_space<vmem>>, %arg2: memref<1x20xf32, #tpu.memory_space<vmem>>, %arg3: memref<1x1xf32, #tpu.memory_space<smem>>, %arg4: memref<1x8xf32, #tpu.memory_space<vmem>>) attributes {dimension_semantics = [#tpu.dimension_semantics<parallel>], iteration_bounds = array<i64: 1>, scalar_prefetch = 0 : i64, scratch_operands = 0 : i64, tpu.core_type = #tpu.core_type<tc>, window_params = [{transform_indices = @transform_0, window_bounds = array<i64: 8, 20>}, {pipeline_mode = #tpu.pipeline_mode<synchronous>, transform_indices = @transform_1, window_bounds = array<i64: 1, 20>}, {transform_indices = @transform_2, window_bounds = array<i64: 1, 1>}, {transform_indices = @transform_3, window_bounds = array<i64: 1, 8>}]} {
    %c0 = arith.constant 0 : index
    %c0_0 = arith.constant 0 : index
    %0 = vector.load %arg1[%c0, %c0_0] : memref<8x20xf32, #tpu.memory_space<vmem>>, vector<8x20xf32>
    %c0_1 = arith.constant 0 : index
    %c0_2 = arith.constant 0 : index
    %1 = vector.load %arg2[%c0_1, %c0_2] : memref<1x20xf32, #tpu.memory_space<vmem>>, vector<1x20xf32>
    %2 = vector.broadcast %1 : vector<1x20xf32> to vector<8x20xf32>
    %3 = arith.mulf %0, %2 : vector<8x20xf32>
    %cst = arith.constant dense<0.000000e+00> : vector<8xf32>
    %4 = vector.multi_reduction <add>, %3, %cst [1] : vector<8x20xf32> to vector<8xf32>
    %c0_3 = arith.constant 0 : index
    %c0_4 = arith.constant 0 : index
    %5 = memref.load %arg3[%c0_3, %c0_4] : memref<1x1xf32, #tpu.memory_space<smem>>
    %6 = vector.broadcast %5 : f32 to vector<8xf32>
    %7 = arith.addf %4, %6 : vector<8xf32>
    %8 = vector.shape_cast %7 : vector<8xf32> to vector<1x8xf32>
    %c0_5 = arith.constant 0 : index
    %c0_6 = arith.constant 0 : index
    %9 = vector.load %arg4[%c0_5, %c0_6] : memref<1x8xf32, #tpu.memory_space<vmem>>, vector<1x8xf32>
    tpu.vector_store %arg4[%c0_5, %c0_6], %8 {strides = array<i32>} : memref<1x8xf32, #tpu.memory_space<vmem>>, vector<1x8xf32>,
    return
  }
  func.func @transform_0(%arg0: i32) -> (i32, i32) {
    %c0_i32 = arith.constant 0 : i32
    %c0_i32_0 = arith.constant 0 : i32
    return %arg0, %c0_i32 : i32, i32
  }
  func.func @transform_1(%arg0: i32) -> (i32, i32) {
    %c0_i32 = arith.constant 0 : i32
    %c0_i32_0 = arith.constant 0 : i32
    %c0_i32_1 = arith.constant 0 : i32
    return %c0_i32, %c0_i32_0 : i32, i32
  }
  func.func @transform_2(%arg0: i32) -> (i32, i32) {
    %c0_i32 = arith.constant 0 : i32
    %c0_i32_0 = arith.constant 0 : i32
    %c0_i32_1 = arith.constant 0 : i32
    return %c0_i32, %c0_i32_0 : i32, i32
  }
  func.func @transform_3(%arg0: i32) -> (i32, i32) {
    %c0_i32 = arith.constant 0 : i32
    %c0_i32_0 = arith.constant 0 : i32
    return %c0_i32, %arg0 : i32, i32
  }
}

</mosaic_0001>

<bundles_post_ra>
// kernel: mlp_forward.1
= control target key start
LH: loop header
LB: loop body
LE: loop exit
PB: predicated region body
PF: predicated region fallthrough
CT: control target
= control target key end

     0   :  { %9 = vsyncpa [#allocation4], 0  ;;  %s172_s0 = inlined_call_operand.hbm [shape: f32[8,20], index: 0, kind: input, shape index: {}]   ;;  %s173_s1 = inlined_call_operand.vmem [shape: f32[1,20], index: 1, kind: input, shape index: {}]   ;;  %s174_s2 = inlined_call_operand.<no memory space> [shape: f32[1,1], index: 2, kind: input, shape index: {}]   ;;  %s175_s3 = inlined_call_operand.hbm [shape: f32[1,8], index: 3, kind: output, shape index: {}]  }
   0x1   :  { %10 = vsyncpa [#allocation5], 0  ;;  %s120_s12 = smov [#allocation3]   ;;  %s72_s16 = scalar_lea.hbm %s172_s0, 128 }
   0x2   :  { %s17_s13 = sshll.u32 %s120_s12, 4  ;;  %p73_p0 = scmp.ne.s32.totalorder %s172_s0, %s72_s16  ;;  %s18_s13 = int_to_ptr.vmem [resolvable:$true] %s17_s13 }
   0x3   :  { %p76_p1 = scmp.lt.u32.totalorder %s72_s16, %s172_s0 }
   0x5   :  { %p78_p2 = pnand %p76_p1, %p73_p0 }
   0x7   :  { %81 = shalt.err (!%p78_p2)
}
   0x8   :  { %s82_s21 = scalar_lea.vmem %s18_s13, 128  ;;  %p87_p4 = scmp.lt.s32.totalorder %s18_s13, %s18_s13 }
   0x9   :  { %p83_p3 = scmp.ne.s32.totalorder %s18_s13, %s82_s21  ;;  %p88_p5 = scmp.lt.s32.totalorder %s82_s21, %s82_s21 }
   0xb   :  { %p89_p6 = por %p88_p5, %p87_p4 }
   0xd   :  { %p90_p7 = pnand %p89_p6, %p83_p3 }
   0xf   :  { %93 = shalt.err (!%p90_p7)
}
  0x10   :  { %20 = dma.hbm_to_vmem [thread:$0]  %s172_s0, 128, %s18_s13, [#allocation4]  }
  0x11   :  { %116 = dma.done.wait [#allocation4], 128  }
  0x12   :  { %117 = vsyncadd [#allocation4], 4294967168  ;;  %v28_v0 = vld [vmem:[#allocation3] sm:$0xff]  ;;  %vm37_vm0 = vcmask 162816   ;;  %v45_v4 = vlaneseq  ;;  %v42_v7 = vstv %s174_s2  ;;  %s121_s0 = smov [#allocation6]   ;;  %vm52_vm1 = vcmask 57344  }
  0x13   :  { %v69_v1 = vld [vmem:[%s173_s1] ss:$0 sm:$0xff]  ;;  %s60_s28 = sshll.u32 %s121_s0, 4  ;;  %s61_s28 = int_to_ptr.vmem [resolvable:$true] %s60_s28 }
  0x14   :  { %v36_v2 = vmul.f32 %v69_v1, %v28_v0  ;;  %v46_v5 = vand.u32 127, %v45_v4  ;;  %v48_v6 = vshrl.u32 %v45_v4, 7  ;;  %s94_s1 = scalar_lea.vmem %s61_s28, 16  ;;  %s98_s29 = scalar_lea.vmem %s61_s28, 32 }
  0x15   :  { %p95_p8 = scmp.ne.s32.totalorder %s61_s28, %s94_s1  ;;  %p99_p9 = scmp.lt.s32.totalorder %s61_s28, %s61_s28 }
  0x16   :  { %v38_v3 = vsel %vm37_vm0, %v36_v2, 0.0  ;;  %v49_v8 = vsub.s32 %v46_v5, %v48_v6  ;;  %p100_p10 = scmp.lt.s32.totalorder %s98_s29, %s94_s1 }
  0x17   :  { %39 = vadd.xlane.f32.xlu0 %v38_v3 }
  0x18   :  { %p101_p11 = por %p100_p10, %p99_p9 }
  0x1a   :  { %p102_p12 = pnand %p101_p11, %p95_p8 }
  0xa4   :  { %v40_v9 = vpop.xlane.xlu0 %39 }
  0xa5   :  { %v43_v10 = vadd.f32 %v42_v7, %v40_v9 }
  0xa7   :  { %v50_v11 = vrot.slane %v43_v10, %v49_v8 }
  0xa9   :  { %53 = vst.msk [vmem:[#allocation6] sm:$0x1] %vm52_vm1, %v50_v11 }
  0xaa   :  { %105 = shalt.err (!%p102_p12)
}
  0xab   :  { %s106_s2 = scalar_lea.hbm %s175_s3, 16 }
  0xac   :  { %p107_p13 = scmp.ne.s32.totalorder %s175_s3, %s106_s2  ;;  %p110_p0 = scmp.lt.u32.totalorder %s106_s2, %s175_s3 }
  0xae   :  { %p112_p1 = pnand %p110_p0, %p107_p13 }
  0xb0   :  { %115 = shalt.err (!%p112_p1)
}
  0xb1   :  { %63 = dma.vmem_to_hbm [thread:$0]  %s61_s28, 16, %s175_s3, [#allocation5]  }
  0xb2   :  { %118 = dma.done.wait [#allocation5], 16  }
  0xb3   :  { %119 = vsyncadd [#allocation5], 4294967280 }
  0xb4   :  { %67 = vsyncpa [#allocation4], 1 }
  0xb5   :  { %68 = vsyncpa [#allocation5], 1 }

</bundles_post_ra>
